<compile_context>
chip_gen: v7x
topology: tpu7x:2x2x1
jax: 0.10.0
libtpu: 0.0.40
codegen_flags: <defaults>
</compile_context>

<pallas_src>
import functools

import jax
import jax.numpy as jnp
from jax import lax
from jax.experimental import pallas as pl
from jax.experimental.pallas import tpu as pltpu

BN_EPS = 1e-5


def _round_up(x, m):
    return (x + m - 1) // m * m


def _pad1d(a, n):
    return jnp.pad(a.astype(jnp.float32), (0, n - a.shape[0]))


def _pad2d(a, n):
    out = jnp.zeros((n, n), jnp.float32)
    return out.at[:a.shape[0], :a.shape[1]].set(a.astype(jnp.float32))


def gcn_fused_kernel(adj_ref, x_ref, wg_ref, wr_ref, bg_ref, br_ref,
                     gamma_ref, beta_ref, out_ref,
                     hn_ref, sum_ref, sq_ref, *, n_true, tm):
    """Grid = (layer, row_tile).  out_ref doubles as the resident per-layer h."""
    l = pl.program_id(0)
    i = pl.program_id(1)
    n_tiles = pl.num_programs(1)

    # Load the (padded) input features once as the layer-0 h.
    @pl.when((l == 0) & (i == 0))
    def _init():
        out_ref[...] = x_ref[...]

    # Reset BN accumulators at the start of every layer's row sweep.
    @pl.when(i == 0)
    def _reset_stats():
        sum_ref[...] = jnp.zeros_like(sum_ref)
        sq_ref[...] = jnp.zeros_like(sq_ref)

    row0 = pl.multiple_of(i * tm, tm)

    # --- GraphConv sum aggregation for this row tile (MXU, bf16 operands, f32 acc).
    adj_t = adj_ref[...].astype(jnp.bfloat16)                # (tm, N_pad) int8 -> bf16
    h_all = out_ref[...].astype(jnp.bfloat16)                # (N_pad, F)
    agg = jnp.dot(adj_t, h_all, preferred_element_type=jnp.float32)   # (tm, F) f32

    # --- Two separate FxF transforms (graph-conv weight and residual Linear).
    z_gc = jnp.dot(agg.astype(jnp.bfloat16), wg_ref[...],
                   preferred_element_type=jnp.float32) + bg_ref[...]
    z_gc = jnp.maximum(z_gc, 0.0)                            # relu(gc)

    x_tile = out_ref[pl.ds(row0, tm), :]                     # layer input rows (f32)
    z_rs = jnp.dot(x_tile.astype(jnp.bfloat16), wr_ref[...],
                   preferred_element_type=jnp.float32) + br_ref[...]
    z_rs = jnp.maximum(z_rs, 0.0)                            # relu(res)

    hn_tile = z_gc + z_rs                                    # (tm, F) f32
    # TODO(synk): nn.Dropout(p=0.5) in training mode uses PyTorch RNG that cannot
    # be reproduced bit-exactly; implemented as identity (eval mode).

    hn_ref[pl.ds(row0, tm), :] = hn_tile

    # --- Single-sweep BN statistics (sum, sum of squares); padded rows masked out.
    rows = row0 + lax.broadcasted_iota(jnp.int32, (tm, 1), 0)
    valid = rows < n_true
    masked = jnp.where(valid, hn_tile, 0.0)
    sum_ref[...] += jnp.sum(masked, axis=0, keepdims=True)
    sq_ref[...] += jnp.sum(masked * masked, axis=0, keepdims=True)

    # --- Finalize layer: BatchNorm over the node dim (training-mode batch stats,
    # biased variance, eps=1e-5).  Result becomes the next layer's resident h.
    @pl.when(i == n_tiles - 1)
    def _finalize():
        inv_n = 1.0 / float(n_true)
        mean = sum_ref[...] * inv_n
        var = jnp.maximum(sq_ref[...] * inv_n - mean * mean, 0.0)
        inv_std = lax.rsqrt(var + BN_EPS)
        out_ref[...] = ((hn_ref[...] - mean) * (inv_std * gamma_ref[...])
                        + beta_ref[...])


def gcn_forward(adj, feats, params, *, tm=None):
    """Full GCN forward (all layers) as a single fused, row-tiled Pallas call."""
    n = int(adj.shape[0])
    n_layers = len(params)
    f_dims = [feats.shape[1]] + [p[0].shape[1] for p in params]
    f_pad = _round_up(max(f_dims), 128)          # lane-dense feature width
    f_out_last = params[-1][0].shape[1]

    if tm is None:
        # v7x has 64 MiB VMEM (32 MiB default scoped): keep tm modest; always a
        # multiple of 32 so int8 adj row tiles stay sublane-pack aligned.
        tm = 256 if n >= 256 else _round_up(n, 32)
    assert tm % 32 == 0
    n_pad = _round_up(n, tm)
    n_tiles = n_pad // tm

    # --- pack per-layer parameters (lane-padded; weights bf16, the rest f32).
    wg, wr, bg, br, gm, bt = [], [], [], [], [], []
    for (w, b, w_res, b_res, gamma, beta) in params:
        wg.append(_pad2d(w, f_pad).astype(jnp.bfloat16))
        wr.append(_pad2d(w_res, f_pad).astype(jnp.bfloat16))
        bg.append(_pad1d(b, f_pad)[None, :])
        br.append(_pad1d(b_res, f_pad)[None, :])
        gm.append(_pad1d(gamma, f_pad)[None, :])      # zero-padded -> padded lanes stay 0
        bt.append(_pad1d(beta, f_pad)[None, :])
    wg_all = jnp.stack(wg)                 # (L, F, F) bf16
    wr_all = jnp.stack(wr)                 # (L, F, F) bf16
    bg_all = jnp.stack(bg)                 # (L, 1, F) f32
    br_all = jnp.stack(br)
    gm_all = jnp.stack(gm)
    bt_all = jnp.stack(bt)

    # adj stored in HBM as int8 (0/1 exact); padded rows/cols are zero.
    adj_i8 = jnp.zeros((n_pad, n_pad), jnp.int8).at[:n, :n].set(adj.astype(jnp.int8))
    x_pad = jnp.zeros((n_pad, f_pad), jnp.float32)
    x_pad = x_pad.at[:n, :feats.shape[1]].set(feats.astype(jnp.float32))

    grid = (n_layers, n_tiles)

    in_specs = [
        pl.BlockSpec((tm, n_pad), lambda l, i: (i, 0)),               # adj row tile (int8)
        pl.BlockSpec((n_pad, f_pad), lambda l, i: (0, 0)),            # x (resident)
        pl.BlockSpec((None, f_pad, f_pad), lambda l, i: (l, 0, 0)),   # W   (per layer)
        pl.BlockSpec((None, f_pad, f_pad), lambda l, i: (l, 0, 0)),   # Wr  (per layer)
        pl.BlockSpec((None, 1, f_pad), lambda l, i: (l, 0, 0)),       # b
        pl.BlockSpec((None, 1, f_pad), lambda l, i: (l, 0, 0)),       # br
        pl.BlockSpec((None, 1, f_pad), lambda l, i: (l, 0, 0)),       # gamma
        pl.BlockSpec((None, 1, f_pad), lambda l, i: (l, 0, 0)),       # beta
    ]
    out_spec = pl.BlockSpec((n_pad, f_pad), lambda l, i: (0, 0))      # resident h / output

    scratch_shapes = [
        pltpu.VMEM((n_pad, f_pad), jnp.float32),   # pre-BN layer output
        pltpu.VMEM((1, f_pad), jnp.float32),       # BN sum
        pltpu.VMEM((1, f_pad), jnp.float32),       # BN sum of squares
    ]

    # Rough VMEM need (double-buffered streamed operands + resident buffers).
    vmem_bytes = (2 * tm * n_pad * 1              # adj tiles, int8
                  + 2 * n_pad * f_pad * 4         # x
                  + 2 * 2 * f_pad * f_pad * 2     # W + Wr, bf16
                  + 2 * 4 * f_pad * 4             # biases / gamma / beta
                  + 2 * n_pad * f_pad * 4         # out (h) + hn scratch
                  + 2 * f_pad * 4)                # stat scratch
    vmem_limit = int(min(48 * 1024 * 1024, max(16 * 1024 * 1024, 2 * vmem_bytes)))

    flops = n_layers * (2 * n_pad * n_pad * f_pad + 2 * 2 * n_pad * f_pad * f_pad)
    bytes_accessed = (n_layers * adj_i8.size            # adj re-streamed per layer
                      + x_pad.size * 4
                      + (wg_all.size + wr_all.size) * 2
                      + (bg_all.size + br_all.size + gm_all.size + bt_all.size) * 4
                      + n_pad * f_pad * 4)

    out = pl.pallas_call(
        functools.partial(gcn_fused_kernel, n_true=n, tm=tm),
        out_shape=jax.ShapeDtypeStruct((n_pad, f_pad), jnp.float32),
        grid=grid,
        in_specs=in_specs,
        out_specs=out_spec,
        scratch_shapes=scratch_shapes,
        compiler_params=pltpu.CompilerParams(
            dimension_semantics=("arbitrary", "arbitrary"),
            vmem_limit_bytes=vmem_limit),
        cost_estimate=pl.CostEstimate(flops=flops,
                                      transcendentals=n_layers * f_pad,
                                      bytes_accessed=bytes_accessed),
    )(adj_i8, x_pad, wg_all, wr_all, bg_all, br_all, gm_all, bt_all)

    # Slice padded rows / feature lanes outside (kernel stores stay lane-dense).
    return out[:n, :f_out_last]


def gcn_reference(adj, feats, params):
    """Pure-JAX f32 reference of the same forward pass (dropout = identity)."""
    a = adj.astype(jnp.float32)
    h = feats.astype(jnp.float32)
    for (w, b, wr, br, gamma, beta) in params:
        gc = jax.nn.relu(a @ h @ w + b)
        rs = jax.nn.relu(h @ wr + br)
        hn = gc + rs
        mean = hn.mean(axis=0, keepdims=True)
        var = ((hn - mean) ** 2).mean(axis=0, keepdims=True)
        h = gamma * (hn - mean) / jnp.sqrt(var + BN_EPS) + beta
    return h


def init_gcn_params(key, in_feats, hidden_feats):
    """Deterministic synthetic parameters for each GCNLayer."""
    params = []
    f_in = in_feats
    for f_out in hidden_feats:
        key, k1, k2, k3, k4, k5, k6 = jax.random.split(key, 7)
        w = 0.1 * jax.random.normal(k1, (f_in, f_out), jnp.float32)
        b = 0.1 * jax.random.normal(k2, (f_out,), jnp.float32)
        wr = 0.1 * jax.random.normal(k3, (f_in, f_out), jnp.float32)
        br = 0.1 * jax.random.normal(k4, (f_out,), jnp.float32)
        gamma = 1.0 + 0.1 * jax.random.normal(k5, (f_out,), jnp.float32)
        beta = 0.1 * jax.random.normal(k6, (f_out,), jnp.float32)
        params.append((w, b, wr, br, gamma, beta))
        f_in = f_out
    return params


if __name__ == "__main__":
    key = jax.random.PRNGKey(0)
    k_adj, k_x, k_p = jax.random.split(key, 3)

    # Small synthetic graph: N=48 nodes, in_feats=16, hidden_feats=[64, 64]
    # (module defaults).  tm=32 forces a 2-tile row sweep to exercise the
    # tiled BN-statistics accumulation path.
    N, IN_FEATS = 48, 16
    HIDDEN_FEATS = [64, 64]

    # Random directed adjacency with self-loops; adj[i, j] = 1 for edge j -> i.
    adj = (jax.random.uniform(k_adj, (N, N)) < 0.25).astype(jnp.float32)
    adj = jnp.maximum(adj, jnp.eye(N, dtype=jnp.float32))

    feats = jax.random.normal(k_x, (N, IN_FEATS), jnp.float32)
    params = init_gcn_params(k_p, IN_FEATS, HIDDEN_FEATS)

    out = gcn_forward(adj, feats, params, tm=32)
    out = jax.block_until_ready(out)

    assert out.shape == (N, HIDDEN_FEATS[-1])
    assert bool(jnp.all(jnp.isfinite(out)))

    ref = gcn_reference(adj, feats, params)
    max_err = float(jnp.max(jnp.abs(out - ref)))
    assert max_err < 0.25, f"max abs error vs f32 reference too large: {max_err}"

    print("KERNEL_OK")
</pallas_src>

<mosaic_0001>
module attributes {stable_mosaic.version = 11 : i64} {
  func.func @gcn_fused_kernel(%arg0: i32, %arg1: i32, %arg2: memref<32x64xi8, #tpu.memory_space<vmem>>, %arg3: memref<64x128xf32, #tpu.memory_space<vmem>>, %arg4: memref<1x128x128xbf16, #tpu.memory_space<vmem>>, %arg5: memref<1x128x128xbf16, #tpu.memory_space<vmem>>, %arg6: memref<1x1x128xf32, #tpu.memory_space<vmem>>, %arg7: memref<1x1x128xf32, #tpu.memory_space<vmem>>, %arg8: memref<1x1x128xf32, #tpu.memory_space<vmem>>, %arg9: memref<1x1x128xf32, #tpu.memory_space<vmem>>, %arg10: memref<64x128xf32, #tpu.memory_space<vmem>>, %arg11: memref<64x128xf32, #tpu.memory_space<vmem>>, %arg12: memref<1x128xf32, #tpu.memory_space<vmem>>, %arg13: memref<1x128xf32, #tpu.memory_space<vmem>>) attributes {dimension_semantics = [#tpu.dimension_semantics<arbitrary>, #tpu.dimension_semantics<arbitrary>], iteration_bounds = array<i64: 2, 2>, scalar_prefetch = 0 : i64, scratch_operands = 3 : i64, tpu.core_type = #tpu.core_type<tc>, window_params = [{transform_indices = @transform_0, window_bounds = array<i64: 32, 64>}, {pipeline_mode = #tpu.pipeline_mode<synchronous>, transform_indices = @transform_1, window_bounds = array<i64: 64, 128>}, {transform_indices = @transform_2, window_bounds = array<i64: 1, 128, 128>}, {transform_indices = @transform_3, window_bounds = array<i64: 1, 128, 128>}, {transform_indices = @transform_4, window_bounds = array<i64: 1, 1, 128>}, {transform_indices = @transform_5, window_bounds = array<i64: 1, 1, 128>}, {transform_indices = @transform_6, window_bounds = array<i64: 1, 1, 128>}, {transform_indices = @transform_7, window_bounds = array<i64: 1, 1, 128>}, {pipeline_mode = #tpu.pipeline_mode<synchronous>, transform_indices = @transform_8, window_bounds = array<i64: 64, 128>}]} {
    %c0_i32 = arith.constant 0 : i32
    %0 = arith.cmpi eq, %arg0, %c0_i32 : i32
    %c0_i32_0 = arith.constant 0 : i32
    %1 = arith.cmpi eq, %arg1, %c0_i32_0 : i32
    %2 = arith.andi %0, %1 : i1
    %3 = arith.extui %2 : i1 to i32
    %c0_i32_1 = arith.constant 0 : i32
    %4 = arith.cmpi ne, %3, %c0_i32_1 : i32
    scf.if %4 {
      %c0_37 = arith.constant 0 : index
      %c0_38 = arith.constant 0 : index
      %63 = vector.load %arg3[%c0_37, %c0_38] : memref<64x128xf32, #tpu.memory_space<vmem>>, vector<64x128xf32>
      %c0_39 = arith.constant 0 : index
      %c0_40 = arith.constant 0 : index
      %64 = vector.load %arg10[%c0_39, %c0_40] : memref<64x128xf32, #tpu.memory_space<vmem>>, vector<64x128xf32>
      tpu.vector_store %arg10[%c0_39, %c0_40], %63 {strides = array<i32>} : memref<64x128xf32, #tpu.memory_space<vmem>>, vector<64x128xf32>,
    } else {
    }
    %c0_i32_2 = arith.constant 0 : i32
    %5 = arith.cmpi eq, %arg1, %c0_i32_2 : i32
    %6 = arith.extui %5 : i1 to i32
    %c0_i32_3 = arith.constant 0 : i32
    %7 = arith.cmpi ne, %6, %c0_i32_3 : i32
    scf.if %7 {
      %cst_37 = arith.constant 0.000000e+00 : f32
      %63 = vector.broadcast %cst_37 : f32 to vector<1x128xf32>
      %c0_38 = arith.constant 0 : index
      %c0_39 = arith.constant 0 : index
      %64 = vector.load %arg12[%c0_38, %c0_39] : memref<1x128xf32, #tpu.memory_space<vmem>>, vector<1x128xf32>
      tpu.vector_store %arg12[%c0_38, %c0_39], %63 {strides = array<i32>} : memref<1x128xf32, #tpu.memory_space<vmem>>, vector<1x128xf32>,
      %cst_40 = arith.constant 0.000000e+00 : f32
      %65 = vector.broadcast %cst_40 : f32 to vector<1x128xf32>
      %c0_41 = arith.constant 0 : index
      %c0_42 = arith.constant 0 : index
      %66 = vector.load %arg13[%c0_41, %c0_42] : memref<1x128xf32, #tpu.memory_space<vmem>>, vector<1x128xf32>
      tpu.vector_store %arg13[%c0_41, %c0_42], %65 {strides = array<i32>} : memref<1x128xf32, #tpu.memory_space<vmem>>, vector<1x128xf32>,
    } else {
    }
    %c32_i32 = arith.constant 32 : i32
    %8 = arith.muli %arg1, %c32_i32 : i32
    %9 = tpu.assume_multiple %8, 32 : i32
    %c0 = arith.constant 0 : index
    %c0_4 = arith.constant 0 : index
    %10 = vector.load %arg2[%c0, %c0_4] : memref<32x64xi8, #tpu.memory_space<vmem>>, vector<32x64xi8>
    %11 = arith.sitofp %10 : vector<32x64xi8> to vector<32x64xbf16>
    %c0_5 = arith.constant 0 : index
    %c0_6 = arith.constant 0 : index
    %12 = vector.load %arg10[%c0_5, %c0_6] : memref<64x128xf32, #tpu.memory_space<vmem>>, vector<64x128xf32>
    %13 = arith.truncf %12 : vector<64x128xf32> to vector<64x128xbf16>
    %cst = arith.constant dense<0.000000e+00> : vector<32x128xf32>
    %14 = tpu.matmul %11, %13, %cst {dimension_numbers = #tpu.dot_dimension_numbers<[1], [0], [0], [1], [0, 0, 1, 1], [], []>} : vector<32x64xbf16>, vector<64x128xbf16>, vector<32x128xf32> -> vector<32x128xf32>
    %15 = arith.truncf %14 : vector<32x128xf32> to vector<32x128xbf16>
    %c0_7 = arith.constant 0 : index
    %c0_8 = arith.constant 0 : index
    %c0_9 = arith.constant 0 : index
    %16 = vector.load %arg4[%c0_7, %c0_8, %c0_9] : memref<1x128x128xbf16, #tpu.memory_space<vmem>>, vector<1x128x128xbf16>
    %17 = vector.shape_cast %16 : vector<1x128x128xbf16> to vector<128x128xbf16>
    %cst_10 = arith.constant dense<0.000000e+00> : vector<32x128xf32>
    %18 = tpu.matmul %15, %17, %cst_10 {dimension_numbers = #tpu.dot_dimension_numbers<[1], [0], [0], [1], [0, 0, 1, 1], [], []>} : vector<32x128xbf16>, vector<128x128xbf16>, vector<32x128xf32> -> vector<32x128xf32>
    %c0_11 = arith.constant 0 : index
    %c0_12 = arith.constant 0 : index
    %c0_13 = arith.constant 0 : index
    %19 = vector.load %arg6[%c0_11, %c0_12, %c0_13] : memref<1x1x128xf32, #tpu.memory_space<vmem>>, vector<1x1x128xf32>
    %20 = vector.shape_cast %19 : vector<1x1x128xf32> to vector<1x128xf32>
    %21 = vector.broadcast %20 : vector<1x128xf32> to vector<32x128xf32>
    %22 = arith.addf %18, %21 : vector<32x128xf32>
    %cst_14 = arith.constant 0.000000e+00 : f32
    %23 = vector.broadcast %cst_14 : f32 to vector<32x128xf32>
    %24 = arith.maximumf %22, %23 : vector<32x128xf32>
    %25 = arith.index_cast %9 : i32 to index
    %c0_15 = arith.constant 0 : index
    %26 = vector.load %arg10[%25, %c0_15] : memref<64x128xf32, #tpu.memory_space<vmem>>, vector<32x128xf32>
    %27 = arith.truncf %26 : vector<32x128xf32> to vector<32x128xbf16>
    %c0_16 = arith.constant 0 : index
    %c0_17 = arith.constant 0 : index
    %c0_18 = arith.constant 0 : index
    %28 = vector.load %arg5[%c0_16, %c0_17, %c0_18] : memref<1x128x128xbf16, #tpu.memory_space<vmem>>, vector<1x128x128xbf16>
    %29 = vector.shape_cast %28 : vector<1x128x128xbf16> to vector<128x128xbf16>
    %cst_19 = arith.constant dense<0.000000e+00> : vector<32x128xf32>
    %30 = tpu.matmul %27, %29, %cst_19 {dimension_numbers = #tpu.dot_dimension_numbers<[1], [0], [0], [1], [0, 0, 1, 1], [], []>} : vector<32x128xbf16>, vector<128x128xbf16>, vector<32x128xf32> -> vector<32x128xf32>
    %c0_20 = arith.constant 0 : index
    %c0_21 = arith.constant 0 : index
    %c0_22 = arith.constant 0 : index
    %31 = vector.load %arg7[%c0_20, %c0_21, %c0_22] : memref<1x1x128xf32, #tpu.memory_space<vmem>>, vector<1x1x128xf32>
    %32 = vector.shape_cast %31 : vector<1x1x128xf32> to vector<1x128xf32>
    %33 = vector.broadcast %32 : vector<1x128xf32> to vector<32x128xf32>
    %34 = arith.addf %30, %33 : vector<32x128xf32>
    %cst_23 = arith.constant 0.000000e+00 : f32
    %35 = vector.broadcast %cst_23 : f32 to vector<32x128xf32>
    %36 = arith.maximumf %34, %35 : vector<32x128xf32>
    %37 = arith.addf %24, %36 : vector<32x128xf32>
    %38 = arith.index_cast %9 : i32 to index
    %c0_24 = arith.constant 0 : index
    %39 = vector.load %arg11[%38, %c0_24] : memref<64x128xf32, #tpu.memory_space<vmem>>, vector<32x128xf32>
    tpu.vector_store %arg11[%38, %c0_24], %37 {strides = array<i32>} : memref<64x128xf32, #tpu.memory_space<vmem>>, vector<32x128xf32>,
    %40 = tpu.iota {dimensions = array<i32: 0>} : vector<32x1xi32>
    %41 = vector.broadcast %9 : i32 to vector<32x1xi32>
    %42 = arith.addi %41, %40 : vector<32x1xi32>
    %c48_i32 = arith.constant 48 : i32
    %43 = vector.broadcast %c48_i32 : i32 to vector<32x1xi32>
    %44 = arith.cmpi slt, %42, %43 : vector<32x1xi32>
    %cst_25 = arith.constant 0.000000e+00 : f32
    %45 = vector.shape_cast %44 : vector<32x1xi1> to vector<32x1xi1>
    %46 = vector.broadcast %45 : vector<32x1xi1> to vector<32x128xi1>
    %47 = vector.broadcast %cst_25 : f32 to vector<32x128xf32>
    %48 = arith.select %46, %37, %47 : vector<32x128xi1>, vector<32x128xf32>
    %c0_26 = arith.constant 0 : index
    %c0_27 = arith.constant 0 : index
    %49 = vector.load %arg12[%c0_26, %c0_27] : memref<1x128xf32, #tpu.memory_space<vmem>>, vector<1x128xf32>
    %cst_28 = arith.constant dense<0.000000e+00> : vector<128xf32>
    %50 = vector.multi_reduction <add>, %48, %cst_28 [0] : vector<32x128xf32> to vector<128xf32>
    %51 = vector.shape_cast %50 : vector<128xf32> to vector<1x128xf32>
    %52 = arith.addf %49, %51 : vector<1x128xf32>
    %c0_29 = arith.constant 0 : index
    %c0_30 = arith.constant 0 : index
    %53 = vector.load %arg12[%c0_29, %c0_30] : memref<1x128xf32, #tpu.memory_space<vmem>>, vector<1x128xf32>
    tpu.vector_store %arg12[%c0_29, %c0_30], %52 {strides = array<i32>} : memref<1x128xf32, #tpu.memory_space<vmem>>, vector<1x128xf32>,
    %c0_31 = arith.constant 0 : index
    %c0_32 = arith.constant 0 : index
    %54 = vector.load %arg13[%c0_31, %c0_32] : memref<1x128xf32, #tpu.memory_space<vmem>>, vector<1x128xf32>
    %55 = arith.mulf %48, %48 : vector<32x128xf32>
    %cst_33 = arith.constant dense<0.000000e+00> : vector<128xf32>
    %56 = vector.multi_reduction <add>, %55, %cst_33 [0] : vector<32x128xf32> to vector<128xf32>
    %57 = vector.shape_cast %56 : vector<128xf32> to vector<1x128xf32>
    %58 = arith.addf %54, %57 : vector<1x128xf32>
    %c0_34 = arith.constant 0 : index
    %c0_35 = arith.constant 0 : index
    %59 = vector.load %arg13[%c0_34, %c0_35] : memref<1x128xf32, #tpu.memory_space<vmem>>, vector<1x128xf32>
    tpu.vector_store %arg13[%c0_34, %c0_35], %58 {strides = array<i32>} : memref<1x128xf32, #tpu.memory_space<vmem>>, vector<1x128xf32>,
    %c1_i32 = arith.constant 1 : i32
    %60 = arith.cmpi eq, %arg1, %c1_i32 : i32
    %61 = arith.extui %60 : i1 to i32
    %c0_i32_36 = arith.constant 0 : i32
    %62 = arith.cmpi ne, %61, %c0_i32_36 : i32
    scf.if %62 {
      %c0_37 = arith.constant 0 : index
      %c0_38 = arith.constant 0 : index
      %63 = vector.load %arg12[%c0_37, %c0_38] : memref<1x128xf32, #tpu.memory_space<vmem>>, vector<1x128xf32>
      %cst_39 = arith.constant 0.020833334 : f32
      %64 = vector.broadcast %cst_39 : f32 to vector<1x128xf32>
      %65 = arith.mulf %63, %64 : vector<1x128xf32>
      %c0_40 = arith.constant 0 : index
      %c0_41 = arith.constant 0 : index
      %66 = vector.load %arg13[%c0_40, %c0_41] : memref<1x128xf32, #tpu.memory_space<vmem>>, vector<1x128xf32>
      %cst_42 = arith.constant 0.020833334 : f32
      %67 = vector.broadcast %cst_42 : f32 to vector<1x128xf32>
      %68 = arith.mulf %66, %67 : vector<1x128xf32>
      %69 = arith.mulf %65, %65 : vector<1x128xf32>
      %70 = arith.subf %68, %69 : vector<1x128xf32>
      %cst_43 = arith.constant 0.000000e+00 : f32
      %71 = vector.broadcast %cst_43 : f32 to vector<1x128xf32>
      %72 = arith.maximumf %70, %71 : vector<1x128xf32>
      %cst_44 = arith.constant 9.99999974E-6 : f32
      %73 = vector.broadcast %cst_44 : f32 to vector<1x128xf32>
      %74 = arith.addf %72, %73 : vector<1x128xf32>
      %75 = math.rsqrt %74 : vector<1x128xf32>
      %c0_45 = arith.constant 0 : index
      %c0_46 = arith.constant 0 : index
      %76 = vector.load %arg11[%c0_45, %c0_46] : memref<64x128xf32, #tpu.memory_space<vmem>>, vector<64x128xf32>
      %77 = vector.broadcast %65 : vector<1x128xf32> to vector<64x128xf32>
      %78 = arith.subf %76, %77 : vector<64x128xf32>
      %c0_47 = arith.constant 0 : index
      %c0_48 = arith.constant 0 : index
      %c0_49 = arith.constant 0 : index
      %79 = vector.load %arg8[%c0_47, %c0_48, %c0_49] : memref<1x1x128xf32, #tpu.memory_space<vmem>>, vector<1x1x128xf32>
      %80 = vector.shape_cast %79 : vector<1x1x128xf32> to vector<1x128xf32>
      %81 = arith.mulf %75, %80 : vector<1x128xf32>
      %82 = vector.broadcast %81 : vector<1x128xf32> to vector<64x128xf32>
      %83 = arith.mulf %78, %82 : vector<64x128xf32>
      %c0_50 = arith.constant 0 : index
      %c0_51 = arith.constant 0 : index
      %c0_52 = arith.constant 0 : index
      %84 = vector.load %arg9[%c0_50, %c0_51, %c0_52] : memref<1x1x128xf32, #tpu.memory_space<vmem>>, vector<1x1x128xf32>
      %85 = vector.shape_cast %84 : vector<1x1x128xf32> to vector<1x128xf32>
      %86 = vector.broadcast %85 : vector<1x128xf32> to vector<64x128xf32>
      %87 = arith.addf %83, %86 : vector<64x128xf32>
      %c0_53 = arith.constant 0 : index
      %c0_54 = arith.constant 0 : index
      %88 = vector.load %arg10[%c0_53, %c0_54] : memref<64x128xf32, #tpu.memory_space<vmem>>, vector<64x128xf32>
      tpu.vector_store %arg10[%c0_53, %c0_54], %87 {strides = array<i32>} : memref<64x128xf32, #tpu.memory_space<vmem>>, vector<64x128xf32>,
    } else {
    }
    return
  }
  func.func @transform_0(%arg0: i32, %arg1: i32) -> (i32, i32) {
    %c0_i32 = arith.constant 0 : i32
    %c0_i32_0 = arith.constant 0 : i32
    return %arg1, %c0_i32 : i32, i32
  }
  func.func @transform_1(%arg0: i32, %arg1: i32) -> (i32, i32) {
    %c0_i32 = arith.constant 0 : i32
    %c0_i32_0 = arith.constant 0 : i32
    %c0_i32_1 = arith.constant 0 : i32
    return %c0_i32, %c0_i32_0 : i32, i32
  }
  func.func @transform_2(%arg0: i32, %arg1: i32) -> (i32, i32, i32) {
    %c0_i32 = arith.constant 0 : i32
    %c0_i32_0 = arith.constant 0 : i32
    %c0_i32_1 = arith.constant 0 : i32
    return %arg0, %c0_i32, %c0_i32_0 : i32, i32, i32
  }
  func.func @transform_3(%arg0: i32, %arg1: i32) -> (i32, i32, i32) {
    %c0_i32 = arith.constant 0 : i32
    %c0_i32_0 = arith.constant 0 : i32
    %c0_i32_1 = arith.constant 0 : i32
    return %arg0, %c0_i32, %c0_i32_0 : i32, i32, i32
  }
  func.func @transform_4(%arg0: i32, %arg1: i32) -> (i32, i32, i32) {
    %c0_i32 = arith.constant 0 : i32
    %c0_i32_0 = arith.constant 0 : i32
    %c0_i32_1 = arith.constant 0 : i32
    return %arg0, %c0_i32, %c0_i32_0 : i32, i32, i32
  }
  func.func @transform_5(%arg0: i32, %arg1: i32) -> (i32, i32, i32) {
    %c0_i32 = arith.constant 0 : i32
    %c0_i32_0 = arith.constant 0 : i32
    %c0_i32_1 = arith.constant 0 : i32
    return %arg0, %c0_i32, %c0_i32_0 : i32, i32, i32
  }
  func.func @transform_6(%arg0: i32, %arg1: i32) -> (i32, i32, i32) {
    %c0_i32 = arith.constant 0 : i32
    %c0_i32_0 = arith.constant 0 : i32
    %c0_i32_1 = arith.constant 0 : i32
    return %arg0, %c0_i32, %c0_i32_0 : i32, i32, i32
  }
  func.func @transform_7(%arg0: i32, %arg1: i32) -> (i32, i32, i32) {
    %c0_i32 = arith.constant 0 : i32
    %c0_i32_0 = arith.constant 0 : i32
    %c0_i32_1 = arith.constant 0 : i32
    return %arg0, %c0_i32, %c0_i32_0 : i32, i32, i32
  }
  func.func @transform_8(%arg0: i32, %arg1: i32) -> (i32, i32) {
    %c0_i32 = arith.constant 0 : i32
    %c0_i32_0 = arith.constant 0 : i32
    %c0_i32_1 = arith.constant 0 : i32
    return %c0_i32, %c0_i32_0 : i32, i32
  }
}

</mosaic_0001>

<bundles_post_ra>
// kernel: tpu_custom_call.1
= control target key start
LH: loop header
LB: loop body
LE: loop exit
PB: predicated region body
PF: predicated region fallthrough
CT: control target
= control target key end

     0   :  { %s2130_s0 = inlined_call_operand.hbm [shape: s8[64,64], index: 0, kind: input, shape index: {}]   ;;  %s2131_s1 = inlined_call_operand.hbm [shape: f32[64,128], index: 1, kind: input, shape index: {}]   ;;  %s2132_s2 = inlined_call_operand.hbm [shape: bf16[2,128,128], index: 2, kind: input, shape index: {}]   ;;  %s2133_s3 = inlined_call_operand.hbm [shape: bf16[2,128,128], index: 3, kind: input, shape index: {}]   ;;  %s2134_s4 = inlined_call_operand.vmem [shape: f32[2,1,128], index: 4, kind: input, shape index: {}]   ;;  %s2135_s5 = inlined_call_operand.vmem [shape: f32[2,1,128], index: 5, kind: input, shape index: {}]   ;;  %s2136_s6 = inlined_call_operand.vmem [shape: f32[2,1,128], index: 6, kind: input, shape index: {}]   ;;  %s2137_s7 = inlined_call_operand.vmem [shape: f32[2,1,128], index: 7, kind: input, shape index: {}]   ;;  %s2138_s8 = inlined_call_operand.hbm [shape: f32[64,128], index: 8, kind: output, shape index: {}]  }
   0x1   :  { %2153 = sst [smem:[#allocation23_spill]] %s2130_s0 }
   0x2   :  { %2154 = sst [smem:[#allocation24_spill]] %s2132_s2 }
   0x3   :  { %2155 = sst [smem:[#allocation25_spill]] %s2136_s6 }
   0x4   :  { %2156 = sst [smem:[#allocation26_spill]] %s2137_s7 }
   0x5   :  { %2157 = sst [smem:[#allocation27_spill]] %s2138_s8 }
   0x6   :  { %13 = vsyncpa [#allocation6], 0 }
   0x7   :  { %15 = vsyncpa [#allocation6 + $0x1], 0 }
   0x8   :  { %16 = vsyncpa [#allocation9], 0 }
   0x9   :  { %17 = vsyncpa [#allocation7], 0  ;;  %s1699_s27 = smov 0   ;;  %s1701_s28 = smov 0  }
   0xa   :  { %s1703_s29 = smov 0   ;;  %s1705_s30 = smov 0  }
   0xb   :  { %s1707_s9 = smov 0   ;;  %s1709_s10 = smov 0  }
   0xc   :  { %s1711_s11 = smov 0   ;;  %s1713_s12 = smov 0  }
   0xd   :  { %s1715_s13 = smov 0   ;;  %s1717_s14 = smov 0  }
   0xe   :  { %s1719_s15 = smov 0  }
   0xf LB: > { %2158 = sst [smem:[#allocation17_spill]] %s1620_s10  ;;  %s32_s16 = sadd.s32 1, %s1632_s13  ;;  %s1640_s15 = sphi %s1719_s15, %s23_s15   ;;  %s1636_s14 = sphi %s1717_s14, %s2203_s14   ;;  %s1632_s13 = sphi %s1715_s13, %s2195_s13   ;;  %s1628_s12 = sphi %s1713_s12, %s2202_s12   ;;  %s1624_s11 = sphi %s1711_s11, %s2194_s11   ;;  %s1620_s10 = sphi %s1709_s10, %s2193_s10   ;;  %s1616_s9 = sphi %s1707_s9, %s2201_s9   ;;  %s1612_s30 = sphi %s1705_s30, %s2200_s30   ;;  %s1608_s29 = sphi %s1703_s29, %s2199_s29   ;;  %s1604_s28 = sphi %s1701_s28, %s2198_s28   ;;  %s1600_s27 = sphi %s1699_s27, %s2197_s27  }
  0x10   : > { %2159 = sst [smem:[#allocation18_spill]] %s1632_s13  ;;  %s35_s17 = sadd.s32 1, %s1636_s14 }
  0x11   : > { %p33_p0 = scmp.ge.s32.totalorder %s32_s16, 2  ;;  %s42_s18 = sadd.s32 1, %s1620_s10 }
  0x12   : > { %p49_p1 = scmp.ne.s32.totalorder %s1620_s10, %s1616_s9  ;;  %p50_p2 = scmp.eq.s32.totalorder %s1640_s15, 0 }
  0x13   : > { %s2205_s16 = smov (%p33_p0, %s32_s16), 0  ;;  %s2207_s17 = smov (!%p33_p0, %s35_s17), %s1636_s14 }
  0x14   : > { %2160 = sst [smem:[#allocation19_spill]] %s2205_s16  ;;  %s39_s19 = ssub.s32 %s1632_s13, %s2205_s16 }
  0x15   : > { %p1767_p3 = por %p50_p2, %p49_p1  ;;  %p37_p4 = scmp.ge.s32.totalorder %s2207_s17, 2 }
  0x16   : > { %p40_p5 = scmp.eq.s32.totalorder %s39_s19, 0  ;;  %s89_s21 = sadd.s32 1, %s1608_s29 }
  0x17   : > { %s2209_s17 = smov (%p37_p4, %s2207_s17), 0  ;;  %p96_p7 = scmp.ne.s32.totalorder %s1608_s29, %s1604_s28 }
  0x18   : > { %2162 = sst [smem:[#allocation20_spill]] %s2209_s17  ;;  %s86_s23 = ssub.s32 %s1636_s14, %s2209_s17 }
  0x19   : > { %s1777_s22 = scalar_select %p40_p5, %s1620_s10, %s42_s18  }
  0x1a   : > { %p87_p8 = scmp.eq.s32.totalorder %s86_s23, 0  ;;  %p98_p10 = por %p96_p7, %p50_p2 }
  0x1b   : > { %2163 = sst [smem:[#allocation21_spill]] %s1777_s22  ;;  %p1275_p11 = scmp.lt.s32.totalorder %s1640_s15, 4 }
  0x1c   : > { %s1788_s24 = scalar_select %p87_p8, %s1608_s29, %s89_s21  }
  0x1d   : > { %s290_s25 = sand.u32 1, %s1640_s15   ;;  %s292_s26 = sand.u32 1, %s1620_s10  }
  0x1e   : > { %2164 = sst [smem:[#allocation22_spill]] %s1788_s24  ;;  %s1125_s19 = sshll.u32 %s292_s26, 3 }
  0x1f   : > { %s1126_s16 = sshll.u32 %s1632_s13, 7  ;;  %s2165_s0 = sld [smem:[#allocation23_spill]] }
  0x20   : > { %s294_s18 = scalar_lea.vmem [#allocation5], %s1125_s19  ;;  %p1801_p12 = pnand %p1275_p11, %p1767_p3 }
  0x21   : > { %s301_s23 = sshll.u32 %s294_s18, 4  ;;  %p1807_p13 = pnand %p1275_p11, %p98_p10  ;;  %s1805_s23 = int_to_ptr.vmem [resolvable:$true] %s301_s23 }
  0x22   : > { %s310_s7 = sand.u32 1, %s1608_s29   ;;  %s1812_s8 = scalar_lea.sflag [#allocation6], %s290_s25 }
  0x23   : > { %s2167_s26 = scalar_select %p1807_p13, 1, 0 }
  0x24   : > { %p1396_p1 = pneg %p1801_p12 }
  0x25   : > { %s1797_s6 = scalar_lea.hbm %s2165_s0, %s1126_s16  ;;  %s1399_s18 = scalar_lea.hbm %s2165_s0, 256 }
  0x26   : > { %s1394_s16 = scalar_lea.hbm %s1797_s6, 128  ;;  %p1400_p4 = scmp.lt.u32.totalorder %s1797_s6, %s2165_s0 }
  0x27   : > { %p1395_p0 = scmp.ne.s32.totalorder %s1797_s6, %s1394_s16  ;;  %p1401_p5 = scmp.lt.u32.totalorder %s1399_s18, %s1394_s16 }
  0x28   : > { %p1403_p8 = scmp.lt.u32.totalorder %s1394_s16, %s1797_s6 }
  0x29   : > { %p1397_p2 = pnand %p1396_p1, %p1395_p0  ;;  %p1402_p7 = por %p1401_p5, %p1400_p4 }
  0x2b   : > { %p1398_p3 = pneg %p1397_p2  ;;  %p1404_p10 = por %p1403_p8, %p1402_p7 }
  0x2d   : > { %p1405_p11 = pnand %p1404_p10, %p1398_p3 }
  0x2f   : > { %1408 = shalt.err (!%p1405_p11)
}
  0x30   : > { %s1409_s25 = scalar_lea.vmem %s1805_s23, 128  ;;  %s1642_s20 = smov [#allocation5]  }
  0x31   : > { %p1410_p0 = scmp.ne.s32.totalorder %s1805_s23, %s1409_s25  ;;  %s1414_s19 = sshll.u32 %s1642_s20, 4  ;;  %s1415_s19 = int_to_ptr.vmem [resolvable:$false] %s1414_s19 }
  0x32   : > { %s1416_s13 = scalar_lea.vmem %s1415_s19, 256  ;;  %p1417_p6 = scmp.lt.s32.totalorder %s1805_s23, %s1415_s19 }
  0x33   : > { %p1412_p2 = pnand %p1410_p0, %p1396_p1  ;;  %p1418_p4 = scmp.lt.s32.totalorder %s1416_s13, %s1409_s25 }
  0x35   : > { %p1413_p9 = pneg %p1412_p2  ;;  %p1419_p5 = por %p1418_p4, %p1417_p6 }
  0x37   : > { %p1420_p7 = pnand %p1419_p5, %p1413_p9 }
  0x39   : > { %1423 = shalt.err (!%p1420_p7)
}
  0x3a   : > { %1267 = dma.hbm_to_vmem [thread:$0]  (!%p1801_p12), %s1797_s6, 128, %s1805_s23, %s1812_s8  }
  0x3b   : > { %s1842_s17 = sshll.u32 %s310_s7, 6  ;;  %s1166_s16 = sshll.u32 %s1636_s14, 10 }
  0x3c   : > { %s2168_s2 = sld [smem:[#allocation24_spill]]  ;;  %s312_s21 = scalar_lea.vmem [#allocation10], %s1842_s17 }
  0x3d   : > { %s319_s19 = sshll.u32 %s312_s21, 4  ;;  %p2147_p9 = pneg %p1807_p13  ;;  %s1853_s19 = int_to_ptr.vmem [resolvable:$true] %s319_s19 }
  0x42   : > { %s1850_s20 = scalar_lea.hbm %s2168_s2, %s1166_s16  ;;  %s1429_s13 = scalar_lea.hbm %s2168_s2, 2048 }
  0x43   : > { %s1424_s6 = scalar_lea.hbm %s1850_s20, 1024  ;;  %p1430_p3 = scmp.lt.u32.totalorder %s1850_s20, %s2168_s2 }
  0x44   : > { %p1425_p6 = scmp.ne.s32.totalorder %s1850_s20, %s1424_s6  ;;  %p1431_p8 = scmp.lt.u32.totalorder %s1429_s13, %s1424_s6 }
  0x45   : > { %p1433_p11 = scmp.lt.u32.totalorder %s1424_s6, %s1850_s20 }
  0x46   : > { %p1427_p12 = pnand %p2147_p9, %p1425_p6  ;;  %p1432_p10 = por %p1431_p8, %p1430_p3 }
  0x48   : > { %p1428_p1 = pneg %p1427_p12  ;;  %p1434_p0 = por %p1433_p11, %p1432_p10 }
  0x4a   : > { %p1435_p2 = pnand %p1434_p0, %p1428_p1 }
  0x4c   : > { %1438 = shalt.err (!%p1435_p2)
}
  0x4d   : > { %s1439_s21 = scalar_lea.vmem %s1853_s19, 1024  ;;  %s1643_s23 = smov [#allocation10]  }
  0x4e   : > { %p1440_p4 = scmp.ne.s32.totalorder %s1853_s19, %s1439_s21  ;;  %s1444_s7 = sshll.u32 %s1643_s23, 4  ;;  %s1445_s7 = int_to_ptr.vmem [resolvable:$false] %s1444_s7 }
  0x4f   : > { %s1446_s18 = scalar_lea.vmem %s1445_s7, 2048  ;;  %p1447_p6 = scmp.lt.s32.totalorder %s1853_s19, %s1445_s7 }
  0x50   : > { %p1442_p5 = pnand %p1440_p4, %p2147_p9  ;;  %p1448_p12 = scmp.lt.s32.totalorder %s1446_s18, %s1439_s21 }
  0x52   : > { %p1443_p7 = pneg %p1442_p5  ;;  %p1449_p3 = por %p1448_p12, %p1447_p6 }
  0x54   : > { %p1450_p8 = pnand %p1449_p3, %p1443_p7 }
  0x56   : > { %1453 = shalt.err (!%p1450_p8)
}
  0x57   : > { %s2143_s6 = smov 64   ;;  %s2144_s13 = smov 4  }
  0x58   : > { %1270 = dma.hbm_to_vmem [thread:$0]  (!%p1807_p13), %s1850_s20, 1024, %s1853_s19, %s1812_s8, %s2143_s6, %s2143_s6, %s2144_s13  }
  0x59   : > { %s1885_s25 = sadd.s32 4294967295, %s1640_s15   ;;  %p1122_p10 = scmp.ge.s32.totalorder %s1640_s15, 1 }
  0x5a   : > { %p2146_p1 = scmp.eq.s32.totalorder %s1885_s25, 0  ;;  %p264_p11 = scmp.lt.s32.totalorder %s1640_s15, 5 }
  0x5b   : > { %p2169_p0 = scmp.ne.s32.totalorder %s1616_s9, %s1612_s30  ;;  %p2171_p4 = scmp.ne.s32.totalorder %s1604_s28, %s1600_s27 }
  0x5c   : > { %p1908_p7 = pnand %p1122_p10, %p264_p11  ;;  %s1646_s19 = smov [#allocation8]  }
  0x5d   : > { %p1895_p2 = por %p2146_p1, %p2169_p0  ;;  %p1904_p5 = por %p2171_p4, %p2146_p1 }
  0x5e   : > { %s2173_s20 = scalar_select %p1908_p7, 1, 0 }
  0x5f   : > { %s2170_s21 = scalar_select %p1895_p2, 1, 0 }
  0x60   : > { %s2172_s23 = scalar_select %p1904_p5, 1, 0 }
  0x61   : > { %s276_s7 = sshll.u32 %s1646_s19, 4  ;;  %p1260_p6 = pneg %p1908_p7  ;;  %s277_s7 = int_to_ptr.vmem [resolvable:$true] %s276_s7 }
  0x62   : > { %s1925_s6 = scalar_lea.hbm %s2133_s3, %s1166_s16  ;;  %s333_s13 = scalar_lea.vmem [#allocation11], %s1842_s17 }
  0x63   : > { %p1916_p12 = pnand %p1260_p6, %p2146_p1  ;;  %s340_s0 = sshll.u32 %s333_s13, 4  ;;  %s1928_s0 = int_to_ptr.vmem [resolvable:$true] %s340_s0 }
  0x64   : > { %s1454_s22 = scalar_lea.hbm %s2131_s1, 1024 }
  0x65   : > { %p1455_p3 = scmp.ne.s32.totalorder %s2131_s1, %s1454_s22  ;;  %p1456_p8 = pneg %p1916_p12 }
  0x66   : > { %p1461_p0 = scmp.lt.u32.totalorder %s1454_s22, %s2131_s1 }
  0x67   : > { %p1457_p10 = pnand %p1456_p8, %p1455_p3 }
  0x69   : > { %p1458_p11 = pneg %p1457_p10 }
  0x6b   : > { %p1463_p4 = pnand %p1461_p0, %p1458_p11 }
  0x6d   : > { %1466 = shalt.err (!%p1463_p4)
}
  0x6e   : > { %s1467_s17 = scalar_lea.vmem %s277_s7, 1024  ;;  %p1475_p5 = scmp.lt.s32.totalorder %s277_s7, %s277_s7 }
  0x6f   : > { %p1468_p6 = scmp.ne.s32.totalorder %s277_s7, %s1467_s17  ;;  %p1476_p2 = scmp.lt.s32.totalorder %s1467_s17, %s1467_s17 }
  0x71   : > { %p1470_p1 = pnand %p1468_p6, %p1456_p8  ;;  %p1477_p7 = por %p1476_p2, %p1475_p5 }
  0x73   : > { %p1471_p9 = pneg %p1470_p1 }
  0x75   : > { %p1478_p13 = pnand %p1477_p7, %p1471_p9 }
  0x77   : > { %1481 = shalt.err (!%p1478_p13)
}
  0x78   : > { %s1647_s2 = smov 128   ;;  %s1648_s10 = smov 8  }
  0x79   : > { %1263 = dma.hbm_to_vmem [thread:$0]  (!%p1916_p12), %s2131_s1, 1024, %s277_s7, [#allocation9], %s1647_s2, %s1647_s2, %s1648_s10  }
  0x7a   : > { %s1482_s16 = scalar_lea.hbm %s1925_s6, 1024  ;;  %p2175_p3 = scmp.ne.s32.totalorder %s2167_s26, 0 }
  0x7b   : > { %p1483_p1 = scmp.ne.s32.totalorder %s1925_s6, %s1482_s16  ;;  %s1487_s27 = scalar_lea.hbm %s2133_s3, 2048 }
  0x7c   : > { %p2176_p8 = pneg %p2175_p3  ;;  %p1488_p13 = scmp.lt.u32.totalorder %s1925_s6, %s2133_s3 }
  0x7d   : > { %p1489_p5 = scmp.lt.u32.totalorder %s1487_s27, %s1482_s16  ;;  %p1491_p10 = scmp.lt.u32.totalorder %s1482_s16, %s1925_s6 }
  0x7e   : > { %p1485_p2 = pnand %p1483_p1, %p2176_p8 }
  0x7f   : > { %p1490_p7 = por %p1489_p5, %p1488_p13 }
  0x80   : > { %p1486_p9 = pneg %p1485_p2 }
  0x81   : > { %p1492_p11 = por %p1491_p10, %p1490_p7 }
  0x83   : > { %p1493_p0 = pnand %p1492_p11, %p1486_p9 }
  0x85   : > { %1496 = shalt.err (!%p1493_p0)
}
  0x86   : > { %s1497_s7 = scalar_lea.vmem %s1928_s0, 1024  ;;  %p2177_p4 = pmov %p2176_p8 }
  0x87   : > { %p1498_p12 = scmp.ne.s32.totalorder %s1928_s0, %s1497_s7  ;;  %s1649_s30 = smov [#allocation11]  }
  0x88   : > { %s1502_s2 = sshll.u32 %s1649_s30, 4  ;;  %s1503_s2 = int_to_ptr.vmem [resolvable:$false] %s1502_s2 }
  0x89   : > { %p1500_p6 = pnand %p1498_p12, %p2177_p4  ;;  %s1504_s10 = scalar_lea.vmem %s1503_s2, 2048 }
  0x8a   : > { %p1505_p8 = scmp.lt.s32.totalorder %s1928_s0, %s1503_s2  ;;  %p1506_p2 = scmp.lt.s32.totalorder %s1504_s10, %s1497_s7 }
  0x8b   : > { %p1501_p1 = pneg %p1500_p6 }
  0x8c   : > { %p1507_p13 = por %p1506_p2, %p1505_p8 }
  0x8e   : > { %p1508_p5 = pnand %p1507_p13, %p1501_p1 }
  0x90   : > { %1511 = shalt.err (!%p1508_p5)
}
  0x91   : > { %s2178_s22 = smov 4   ;;  %s2179_s24 = smov 64  }
  0x92   : > { %1273 = dma.hbm_to_vmem [thread:$0]  (!%p2175_p3), %s1925_s6, 1024, %s1928_s0, %s1812_s8, %s2179_s24, %s2179_s24, %s2178_s22  }
  0x93   : > { %p2180_p9 = scmp.ne.s32.totalorder %s2173_s20, 0 }
  0x94   : > { %s378_s16 = sand.u32 (!%p2180_p9), 1, %s1885_s25   ;;  %s380_s13 = sand.u32 (!%p2180_p9), 1, %s1616_s9  }
  0x95   : > { %376 = sbr.rel (%p2180_p9) target bundleno = 737 (0x2e1), region = 52  ;;  %s1977_s19 = sshll.u32 (!%p2180_p9), %s380_s13, 3 }
  0x96   : > { %s379_s27 = scalar_lea.sflag (!%p2180_p9), [#allocation6], %s378_s16  ;;  %s382_s26 = scalar_lea.vmem (!%p2180_p9), [#allocation5], %s1977_s19 }
  0x97   : > { %p2181_p7 = scmp.ne.s32.totalorder (!%p2180_p9), %s2170_s21, 0 }
  0x9c   : > { %1583 = dma.done.wait (%p2181_p7), %s379_s27, 128  }
  0x9d   : > { %1585 = vsyncadd (%p2181_p7), %s379_s27, 4294967168  ;;  %p2182_p3 = scmp.eq.s32.totalorder %s1885_s25, 0 }
  0x9f   : > { %1587 = dma.done.wait (%p2182_p3), [#allocation9], 1024   ;;  %p2183_p10 = pmov %p2182_p3 }
  0xa0   : > { %s393_s0 = sand.u32 1, %s1604_s28   ;;  %p2184_p11 = scmp.ne.s32.totalorder %s2172_s23, 0 }
  0xa1   : > { %1589 = vsyncadd (%p2183_p10), [#allocation9], 4294966272  ;;  %s1136_s8 = sshll.u32 %s393_s0, 6 }
  0xa2   : > { %s1989_s6 = scalar_lea.vmem [#allocation10], %s1136_s8 }
  0xa3   : > { %1591 = dma.done.wait (%p2184_p11), %s379_s27, 2048  }
  0xa4   : > { %1593 = vsyncadd (%p2184_p11), %s379_s27, 4294965248  ;;  %p454_p0 = scmp.lt.s32.totalorder %s1628_s12, 1  ;;  %p467_p12 = scmp.eq.s32.totalorder %s1628_s12, 0 }
  0xa5   : > { %p468_p4 = scmp.eq.s32.totalorder %s1624_s11, 0  ;;  %s2185_s10 = sld [smem:[#allocation25_spill]] }
  0xa6   : > { %s2211_s12 = smov (!%p454_p0, %s1628_s12), 1  ;;  %s2186_s13 = sld [smem:[#allocation26_spill]] }
  0xa7   : > { %p469_p6 = pnand %p468_p4, %p467_p12  ;;  %s456_s18 = scalar_lea.vmem %s2134_s4, %s2211_s12 }
  0xa8   : > { %s459_s7 = scalar_lea.vmem %s2135_s5, %s2211_s12  ;;  %s2017_s0 = scalar_lea.vmem [#allocation11], %s1136_s8  ;;  %v473_v0 = vld [vmem:[#allocation8] sm:$0xff] (!%p469_p6)  ;;  %v474_v1 = vld [vmem:[#allocation8 + $0x8] sm:$0xff] (!%p469_p6)  ;;  %v475_v2 = vld [vmem:[#allocation8 + $0x10] sm:$0xff] (!%p469_p6) }
  0xa9   : > { %472 = sbr.rel (%p469_p6) target bundleno = 176 (0xb0), region = 72  ;;  %481 = vst [vmem:[#allocation12] sm:$0xff] (!%p469_p6), %v473_v0  ;;  %482 = vst [vmem:[#allocation12 + $0x8] sm:$0xff] (!%p469_p6), %v474_v1  ;;  %v476_v3 = vld [vmem:[#allocation8 + $0x18] sm:$0xff] (!%p469_p6)  ;;  %v477_v4 = vld [vmem:[#allocation8 + $0x20] sm:$0xff] (!%p469_p6) }
  0xaa   : > { %483 = vst [vmem:[#allocation12 + $0x10] sm:$0xff] (!%p469_p6), %v475_v2  ;;  %v478_v5 = vld [vmem:[#allocation8 + $0x28] sm:$0xff] (!%p469_p6)  ;;  %484 = vst [vmem:[#allocation12 + $0x18] sm:$0xff] (!%p469_p6), %v476_v3  ;;  %v479_v6 = vld [vmem:[#allocation8 + $0x30] sm:$0xff] (!%p469_p6) }
  0xab   : > { %s462_s22 = scalar_lea.vmem %s2185_s10, %s2211_s12  ;;  %485 = vst [vmem:[#allocation12 + $0x20] sm:$0xff] (!%p469_p6), %v477_v4  ;;  %486 = vst [vmem:[#allocation12 + $0x28] sm:$0xff] (!%p469_p6), %v478_v5  ;;  %v480_v7 = vld [vmem:[#allocation8 + $0x38] sm:$0xff] (!%p469_p6) }
  0xac   : > { %s465_s27 = scalar_lea.vmem %s2186_s13, %s2211_s12  ;;  %487 = vst [vmem:[#allocation12 + $0x30] sm:$0xff] (!%p469_p6), %v479_v6  ;;  %488 = vst [vmem:[#allocation12 + $0x38] sm:$0xff] (!%p469_p6), %v480_v7 }
  0xb0 PF: > { %p1138_p1 = scmp.ne.s32.totalorder %s1624_s11, 0 }
  0xb1   : > { %v1650_v8 = vmov (!%p1138_p1), 0.0  }
  0xb2   : > { %491 = sbr.rel (%p1138_p1) target bundleno = 185 (0xb9), region = 76  ;;  %492 = vst [vmem:[#allocation3] sm:$0x1] (!%p1138_p1), %v1650_v8  ;;  %493 = vst [vmem:[#allocation4] sm:$0x1] (!%p1138_p1), %v1650_v8 }
  0xb9 PF: > { %v498_v9 = vld [vmem:[#allocation12] sm:$0xff]  ;;  %v499_v10 = vld [vmem:[#allocation12 + $0x8] sm:$0xff]  ;;  %v500_v11 = vld [vmem:[#allocation12 + $0x10] sm:$0xff]  ;;  %vm510_vm0 = vcmask 523264   ;;  %s2040_s19 = sshll.u32 %s1624_s11, 5  ;;  %v832_v56 = vlaneseq  ;;  %p1160_p8 = scmp.ne.s32.totalorder %s1624_s11, 1 }
  0xba   : > { %v506_v12 = vpack.c.bf16 %v499_v10, %v498_v9  ;;  %v501_v13 = vld [vmem:[#allocation12 + $0x18] sm:$0xff]  ;;  %v502_v15 = vld [vmem:[#allocation12 + $0x20] sm:$0xff]  ;;  %v503_v16 = vld [vmem:[#allocation12 + $0x28] sm:$0xff]  ;;  %v837_v62 = vstv %s2040_s19 }
  0xbb   : > { %v507_v14 = vpack.c.bf16 %v501_v13, %v500_v11  ;;  %v495_v17 = vld [vmem:[%s382_s26] sm:$0xff]  ;;  %v1377_v20 = vld [vmem:[%s1989_s6] sm:$0xff]   ;;  %v508_v21 = vpack.c.bf16 %v503_v16, %v502_v15  ;;  %v1379_v23 = vld [vmem:[%s1989_s6 + $0x8] sm:$0xff]   ;;  %s692_s26 = scalar_lea.vmem [#allocation12], %s2040_s19  ;;  %v2049_v58 = vshrl.u32 %v832_v56, 7 }
  0xbc   : > { %1194 = vmatprep.subr.bf16.mxu0 %v506_v12  ;;  %v496_v18 = vunpack.c.l.s8.bf16 %v495_v17  ;;  %v504_v19 = vld [vmem:[#allocation12 + $0x30] sm:$0xff]  ;;  %v505_v22 = vld [vmem:[#allocation12 + $0x38] sm:$0xff]  ;;  %1206 = vmatprep.subr.bf16.mxu1 %v1377_v20  ;;  %v1376_v27 = vld [vmem:[%s2017_s0] sm:$0xff]   ;;  %v497_v28 = vunpack.c.h.s8.bf16 %v495_v17 }
  0xbd   : > { %1195 = vmatpush3.bf16.msra.mxu0 %v506_v12  ;;  %1207 = vmatpush3.bf16.msra.mxu1 %v1377_v20  ;;  %v1381_v24 = vld [vmem:[%s1989_s6 + $0x10] sm:$0xff]   ;;  %v509_v25 = vpack.c.bf16 %v505_v22, %v504_v19  ;;  %v1383_v26 = vld [vmem:[%s1989_s6 + $0x18] sm:$0xff]   ;;  %v1378_v29 = vld [vmem:[%s2017_s0 + $0x8] sm:$0xff]   ;;  %v835_v63 = vadd.s32 16, %v2049_v58  ;;  %v834_v0 = vadd.s32 8, %v2049_v58  ;;  %v838_v6 = vadd.s32 %v837_v62, %v2049_v58 }
  0xbe   : > { %1196 = vmatprep.subr.bf16.mxu0 %v507_v14  ;;  %1202 = vmatprep.mubr.msk.bf16.mxu0 %vm510_vm0, %v496_v18  ;;  %v1385_v30 = vld [vmem:[%s1989_s6 + $0x20] sm:$0xff]   ;;  %v1387_v31 = vld [vmem:[%s1989_s6 + $0x28] sm:$0xff]   ;;  %v1380_v32 = vld [vmem:[%s2017_s0 + $0x10] sm:$0xff]   ;;  %v836_v7 = vadd.s32 24, %v2049_v58 }
  0xbf   : > { %1208 = vmatprep.subr.bf16.mxu1 %v1379_v23  ;;  %v1389_v33 = vld [vmem:[%s1989_s6 + $0x30] sm:$0xff]   ;;  %v1382_v34 = vld [vmem:[%s2017_s0 + $0x18] sm:$0xff]   ;;  %v1384_v35 = vld [vmem:[%s2017_s0 + $0x20] sm:$0xff]   ;;  %v840_v13 = vadd.s32 %v837_v62, %v835_v63  ;;  %v839_v16 = vadd.s32 %v837_v62, %v834_v0  ;;  %vm842_vm1 = vcmp.lt.s32.totalorder %v838_v6, 48 }
  0xc0   : > { %v1386_v36 = vld [vmem:[%s2017_s0 + $0x28] sm:$0xff]   ;;  %v1388_v37 = vld [vmem:[%s2017_s0 + $0x30] sm:$0xff]   ;;  %v1390_v38 = vld [vmem:[%s2017_s0 + $0x38] sm:$0xff]   ;;  %v841_v22 = vadd.s32 %v837_v62, %v836_v7 }
  0xc1   : > { %1197 = vmatpush3.bf16.msra.mxu0 %v507_v14  ;;  %1209 = vmatpush3.bf16.msra.mxu1 %v1379_v23  ;;  %v693_v39 = vld [vmem:[%s692_s26] sm:$0xff]  ;;  %v694_v40 = vld [vmem:[%s692_s26 + $0x8] sm:$0xff]  ;;  %v695_v43 = vld [vmem:[%s692_s26 + $0x10] sm:$0xff]  ;;  %vm844_vm2 = vcmp.lt.s32.totalorder %v840_v13, 48  ;;  %vm843_vm3 = vcmp.lt.s32.totalorder %v839_v16, 48 }
  0xc2   : > { %1198 = vmatprep.subr.bf16.mxu0 %v508_v21  ;;  %1210 = vmatprep.subr.bf16.mxu1 %v1381_v24  ;;  %v1391_v41 = vld [vmem:[%s1989_s6 + $0x38] sm:$0xff]   ;;  %v697_v42 = vpack.c.bf16 %v694_v40, %v693_v39  ;;  %v696_v44 = vld [vmem:[%s692_s26 + $0x18] sm:$0xff]  ;;  %v1151_v57 = vld [vmem:[%s459_s7] ss:$0 sm:$0xff]  ;;  %vm845_vm4 = vcmp.lt.s32.totalorder %v841_v22, 48 }
  0xc3   : > { %v698_v45 = vpack.c.bf16 %v696_v44, %v695_v43  ;;  %v1142_v61 = vld [vmem:[%s456_s18] ss:$0 sm:$0xff]  ;;  %s827_s18 = scalar_lea.vmem [#allocation2], %s2040_s19 }
  0xc4   : > { %v921_v6 = vld [vmem:[%s462_s22] sm:$0x1] (!%p1160_p8) }
  0xc5   : > { %1199 = vmatpush3.bf16.msra.mxu0 %v508_v21  ;;  %1211 = vmatpush3.bf16.msra.mxu1 %v1381_v24 }
  0xc6   : > { %1200 = vmatprep.subr.bf16.mxu0 %v509_v25  ;;  %1212 = vmatprep.subr.bf16.mxu1 %v1383_v26 }
  0xc9   : > { %1201 = vmatpush3.bf16.msra.mxu0 %v509_v25  ;;  %1213 = vmatpush3.bf16.msra.mxu1 %v1383_v26 }
  0xca   : > { %1226 = vmatprep.subr.bf16.mxu0 %v1376_v27  ;;  %1214 = vmatprep.subr.bf16.mxu1 %v1385_v30 }
  0xcc   : > { %1203 = vmatmul.mubr.msk.bf16.vlgmr.msra.gmra.mrb[0].mxu0 %vm510_vm0, %v497_v28 }
  0xcd   : > { %1227 = vmatpush3.bf16.msra.mxu0 %v1376_v27  ;;  %1215 = vmatpush3.bf16.msra.mxu1 %v1385_v30 }
  0xce   : > { %1228 = vmatprep.subr.bf16.mxu0 %v1378_v29  ;;  %1216 = vmatprep.subr.bf16.mxu1 %v1387_v31 }
  0xcf   : > { %1242 = vmatprep.mubr.bf16.mxu0 %v697_v42 }
  0xd1   : > { %1229 = vmatpush3.bf16.msra.mxu0 %v1378_v29  ;;  %1217 = vmatpush3.bf16.msra.mxu1 %v1387_v31 }
  0xd2   : > { %1230 = vmatprep.subr.bf16.mxu0 %v1380_v32  ;;  %1218 = vmatprep.subr.bf16.mxu1 %v1389_v33 }
  0xd5   : > { %1231 = vmatpush3.bf16.msra.mxu0 %v1380_v32  ;;  %1219 = vmatpush3.bf16.msra.mxu1 %v1389_v33 }
  0xd6   : > { %1232 = vmatprep.subr.bf16.mxu0 %v1382_v34  ;;  %1220 = vmatprep.subr.bf16.mxu1 %v1391_v41 }
  0xd9   : > { %1233 = vmatpush3.bf16.msra.mxu0 %v1382_v34  ;;  %1221 = vmatpush3.bf16.msra.mxu1 %v1391_v41 }
  0xda   : > { %1234 = vmatprep.subr.bf16.mxu0 %v1384_v35 }
  0xdd   : > { %1235 = vmatpush3.bf16.msra.mxu0 %v1384_v35 }
  0xde   : > { %1236 = vmatprep.subr.bf16.mxu0 %v1386_v36 }
  0xe1   : > { %1237 = vmatpush3.bf16.msra.mxu0 %v1386_v36 }
  0xe2   : > { %1238 = vmatprep.subr.bf16.mxu0 %v1388_v37 }
  0xe5   : > { %1239 = vmatpush3.bf16.msra.mxu0 %v1388_v37 }
  0xe6   : > { %1240 = vmatprep.subr.bf16.mxu0 %v1390_v38 }
  0xe9   : > { %1241 = vmatpush3.bf16.msra.mxu0 %v1390_v38 }
  0xec   : > { %1243 = vmatmul.mubr.bf16.vlgmr.msra.gmra.mrb[4].mxu0 %v698_v45 }
 0x19f   : > { %v1204_v46 = vpop.f32.mrb[0].mxu0 }
 0x1a0   : > { %v551_v47 = vpop.f32.mrb[1].mxu0 }
 0x1a1   : > { %v1205_v48 = vpop.f32.mrb[2].mxu0 }
 0x1a2   : > { %v567_v49 = vpack.c.bf16 %v1205_v48, %v1204_v46  ;;  %v554_v50 = vpop.f32.mrb[3].mxu0 }
 0x1a3   : > { %v566_v51 = vpack.c.bf16 %v554_v50, %v551_v47 }
 0x1a5   : > { %1222 = vmatprep.mubr.bf16.mxu1 %v566_v51  ;;  %v858_v51 = vld [vmem:[#allocation3] sm:$0x1] }
 0x1a6   : > { %1223 = vmatmul.mubr.bf16.vlgmr.msra.gmra.mrb[0].mxu1 %v567_v49 }
 0x1bf   : > { %v1244_v52 = vpop.f32.mrb[4].mxu0 }
 0x1c0   : > { %v804_v53 = vpop.f32.mrb[5].mxu0  ;;  %v813_v59 = vadd.f32 %v1244_v52, %v1151_v57 }
 0x1c1   : > { %v1245_v54 = vpop.f32.mrb[6].mxu0  ;;  %v805_v60 = vadd.f32 %v1151_v57, %v804_v53 }
 0x1c2   : > { %v807_v55 = vpop.f32.mrb[7].mxu0  ;;  %v816_v1 = vadd.f32 %v1245_v54, %v1151_v57  ;;  %v821_v3 = vmax.f32 %v813_v59, 0.0  ;;  %v870_v54 = vld [vmem:[#allocation4] sm:$0x1] }
 0x1c3   : > { %v819_v8 = vmax.f32 %v805_v60, 0.0  ;;  %v808_v9 = vadd.f32 %v1151_v57, %v807_v55 }
 0x1c4   : > { %v822_v17 = vmax.f32 %v816_v1, 0.0 }
 0x1c5   : > { %v820_v23 = vmax.f32 %v808_v9, 0.0 }
 0x279   : > { %v1224_v2 = vpop.f32.mrb[0].mxu1 }
 0x27a   : > { %v682_v4 = vadd.f32 %v1224_v2, %v1142_v61  ;;  %v673_v5 = vpop.f32.mrb[1].mxu1 }
 0x27b   : > { %v674_v10 = vadd.f32 %v1142_v61, %v673_v5  ;;  %v1225_v11 = vpop.f32.mrb[2].mxu1 }
 0x27c   : > { %v690_v12 = vmax.f32 %v682_v4, 0.0  ;;  %v685_v14 = vadd.f32 %v1225_v11, %v1142_v61  ;;  %v676_v15 = vpop.f32.mrb[3].mxu1 }
 0x27d   : > { %v688_v18 = vmax.f32 %v674_v10, 0.0  ;;  %v677_v19 = vadd.f32 %v1142_v61, %v676_v15 }
 0x27e   : > { %v825_v20 = vadd.f32 %v821_v3, %v690_v12  ;;  %v691_v21 = vmax.f32 %v685_v14, 0.0  ;;  %v910_v3 = vsub.s32 (!%p1160_p8), 0, %v2049_v58 }
 0x27f   : > { %v823_v24 = vadd.f32 %v819_v8, %v688_v18  ;;  %v689_v25 = vmax.f32 %v677_v19, 0.0 }
 0x280   : > { %830 = vst [vmem:[%s827_s18 + $0x10] sm:$0xff] %v825_v20  ;;  %v826_v26 = vadd.f32 %v822_v17, %v691_v21  ;;  %v856_v29 = vsel %vm844_vm2, %v825_v20, 0.0 }
 0x281   : > { %828 = vst [vmem:[%s827_s18] sm:$0xff] %v823_v24  ;;  %v854_v27 = vsel %vm842_vm1, %v823_v24, 0.0  ;;  %v824_v28 = vadd.f32 %v820_v23, %v689_v25  ;;  %v873_v35 = vmul.f32 %v856_v29, %v856_v29  ;;  %v1161_v24 = vld [vmem:[%s465_s27] ss:$0 sm:$0xff] (!%p1160_p8) }
 0x282   : > { %831 = vst [vmem:[%s827_s18 + $0x18] sm:$0xff] %v826_v26  ;;  %v871_v31 = vmul.f32 %v854_v27, %v854_v27  ;;  %v857_v34 = vsel %vm845_vm4, %v826_v26, 0.0 }
 0x283   : > { %829 = vst [vmem:[%s827_s18 + $0x8] sm:$0xff] %v824_v28  ;;  %v855_v30 = vsel %vm843_vm3, %v824_v28, 0.0  ;;  %v874_v38 = vmul.f32 %v857_v34, %v857_v34 }
 0x284   : > { %v859_v32 = vadd.f32 %v855_v30, %v854_v27  ;;  %v872_v33 = vmul.f32 %v855_v30, %v855_v30 }
 0x286   : > { %v860_v36 = vadd.f32 %v859_v32, %v856_v29  ;;  %v875_v37 = vadd.f32 %v872_v33, %v871_v31 }
 0x288   : > { %v861_v39 = vadd.f32 %v860_v36, %v857_v34  ;;  %v876_v40 = vadd.f32 %v875_v37, %v873_v35 }
 0x28a   : > { %v862_v41 = vrot.slane %v861_v39, 4  ;;  %v877_v42 = vadd.f32 %v876_v40, %v874_v38  ;;  %v899_v5 = vld [vmem:[#allocation2] sm:$0xff] (!%p1160_p8)  ;;  %v900_v7 = vld [vmem:[#allocation2 + $0x8] sm:$0xff] (!%p1160_p8)  ;;  %v901_v8 = vld [vmem:[#allocation2 + $0x10] sm:$0xff] (!%p1160_p8) }
 0x28b   : > { %v902_v9 = vld [vmem:[#allocation2 + $0x18] sm:$0xff] (!%p1160_p8)  ;;  %v903_v10 = vld [vmem:[#allocation2 + $0x20] sm:$0xff] (!%p1160_p8)  ;;  %v904_v11 = vld [vmem:[#allocation2 + $0x28] sm:$0xff] (!%p1160_p8) }
 0x28c   : > { %v863_v43 = vadd.f32 %v862_v41, %v861_v39  ;;  %v878_v44 = vrot.slane %v877_v42, 4  ;;  %v905_v12 = vld [vmem:[#allocation2 + $0x30] sm:$0xff] (!%p1160_p8)  ;;  %v906_v13 = vld [vmem:[#allocation2 + $0x38] sm:$0xff] (!%p1160_p8) }
 0x28e   : > { %v864_v45 = vrot.slane %v863_v43, 2  ;;  %v879_v46 = vadd.f32 %v878_v44, %v877_v42 }
 0x290   : > { %v865_v47 = vadd.f32 %v864_v45, %v863_v43  ;;  %v880_v48 = vrot.slane %v879_v46, 2 }
 0x292   : > { %v866_v49 = vrot.slane %v865_v47, 1  ;;  %v881_v50 = vadd.f32 %v880_v48, %v879_v46 }
 0x294   : > { %v867_v52 = vadd.f32 %v866_v49, %v865_v47  ;;  %v882_v53 = vrot.slane %v881_v50, 1  ;;  %889 = sbr.rel (%p1160_p8) target bundleno = 705 (0x2c1), region = 80 }
 0x296   : > { %v868_v55 = vadd.f32 %v867_v52, %v858_v51  ;;  %v883_v56 = vadd.f32 %v882_v53, %v881_v50 }
 0x298   : > { %869 = vst [vmem:[#allocation3] sm:$0x1] %v868_v55  ;;  %v884_v57 = vadd.f32 %v883_v56, %v870_v54 }
 0x29a   : > { %885 = vst [vmem:[#allocation4] sm:$0x1] %v884_v57 }
 0x29f   : > { %v890_v59 = vld [vmem:[#allocation3] sm:$0x1] }
 0x2a0   : > { %v891_v61 = vmul.f32 0.020833334, %v890_v59 }
 0x2a1   : > { %v892_v60 = vld [vmem:[#allocation4] sm:$0x1] }
 0x2a2   : > { %v893_v62 = vmul.f32 0.020833334, %v892_v60  ;;  %v894_v63 = vmul.f32 %v891_v61, %v891_v61  ;;  %v911_v4 = vrot.slane %v891_v61, %v910_v3 }
 0x2a4   : > { %v895_v0 = vsub.f32 %v893_v62, %v894_v63  ;;  %v913_v15 = vsub.f32 %v899_v5, %v911_v4  ;;  %v914_v17 = vsub.f32 %v900_v7, %v911_v4  ;;  %v915_v58 = vsub.f32 %v901_v8, %v911_v4 }
 0x2a5   : > { %v916_v18 = vsub.f32 %v902_v9, %v911_v4  ;;  %v917_v19 = vsub.f32 %v903_v10, %v911_v4  ;;  %v918_v20 = vsub.f32 %v904_v11, %v911_v4  ;;  %v919_v21 = vsub.f32 %v905_v12, %v911_v4 }
 0x2a6   : > { %v896_v1 = vmax.f32 %v895_v0, 0.0  ;;  %v920_v22 = vsub.f32 %v906_v13, %v911_v4 }
 0x2a8   : > { %v897_v2 = vadd.f32 1e-05, %v896_v1 }
 0x2aa   : > { %1392 = vrsqrt.f32 %v897_v2 }
 0x2b4   : > { %v1393_v14 = vpop.eup %1392 }
 0x2b5   : > { %v922_v16 = vmul.f32 %v1393_v14, %v921_v6 }
 0x2b7   : > { %v927_v23 = vrot.slane %v922_v16, %v910_v3 }
 0x2b9   : > { %v929_v25 = vmul.f32 %v927_v23, %v913_v15  ;;  %v930_v26 = vmul.f32 %v927_v23, %v914_v17  ;;  %v931_v27 = vmul.f32 %v927_v23, %v915_v58  ;;  %v932_v28 = vmul.f32 %v927_v23, %v916_v18 }
 0x2ba   : > { %v933_v29 = vmul.f32 %v927_v23, %v917_v19  ;;  %v934_v30 = vmul.f32 %v927_v23, %v918_v20  ;;  %v935_v31 = vmul.f32 %v927_v23, %v919_v21  ;;  %v936_v32 = vmul.f32 %v927_v23, %v920_v22 }
 0x2bb   : > { %v944_v33 = vadd.f32 %v1161_v24, %v929_v25  ;;  %v945_v34 = vadd.f32 %v1161_v24, %v930_v26  ;;  %v946_v35 = vadd.f32 %v1161_v24, %v931_v27  ;;  %v947_v36 = vadd.f32 %v1161_v24, %v932_v28 }
 0x2bc   : > { %v948_v37 = vadd.f32 %v1161_v24, %v933_v29  ;;  %v949_v38 = vadd.f32 %v1161_v24, %v934_v30  ;;  %v950_v39 = vadd.f32 %v1161_v24, %v935_v31  ;;  %v951_v40 = vadd.f32 %v1161_v24, %v936_v32 }
 0x2bd   : > { %952 = vst [vmem:[#allocation12] sm:$0xff] %v944_v33  ;;  %953 = vst [vmem:[#allocation12 + $0x8] sm:$0xff] %v945_v34 }
 0x2be   : > { %954 = vst [vmem:[#allocation12 + $0x10] sm:$0xff] %v946_v35  ;;  %955 = vst [vmem:[#allocation12 + $0x18] sm:$0xff] %v947_v36 }
 0x2bf   : > { %956 = vst [vmem:[#allocation12 + $0x20] sm:$0xff] %v948_v37  ;;  %957 = vst [vmem:[#allocation12 + $0x28] sm:$0xff] %v949_v38 }
 0x2c0   : > { %958 = vst [vmem:[#allocation12 + $0x30] sm:$0xff] %v950_v39  ;;  %959 = vst [vmem:[#allocation12 + $0x38] sm:$0xff] %v951_v40 }
 0x2c1 PF: > { %p1277_p2 = scmp.eq.s32.totalorder %s1885_s25, 3  ;;  %s1651_s12 = smov [#allocation12]  }
 0x2c2   : > { %s966_s10 = sshll.u32 %s1651_s12, 4  ;;  %s967_s10 = int_to_ptr.vmem [resolvable:$true] %s966_s10 }
 0x2c3   : > { %s1512_s22 = scalar_lea.vmem %s967_s10, 1024  ;;  %p1519_p7 = scmp.lt.s32.totalorder %s967_s10, %s967_s10 }
 0x2c4   : > { %p1513_p13 = scmp.ne.s32.totalorder %s967_s10, %s1512_s22  ;;  %p1520_p3 = scmp.lt.s32.totalorder %s1512_s22, %s1512_s22 }
 0x2c6   : > { %p1514_p5 = pnand %p1513_p13, %p1277_p2  ;;  %p1521_p10 = por %p1520_p3, %p1519_p7 }
 0x2c8   : > { %p1515_p9 = pneg %p1514_p5 }
 0x2ca   : > { %p1522_p11 = pnand %p1521_p10, %p1515_p9 }
 0x2cc   : > { %1525 = shalt.err (!%p1522_p11)
}
 0x2cd   : > { %s2189_s13 = sld [smem:[#allocation27_spill]] }
 0x2d3   : > { %s2190_s0 = smov %s2189_s13  ;;  %s1526_s27 = scalar_lea.hbm %s2189_s13, 1024 }
 0x2d4   : > { %p1527_p0 = scmp.ne.s32.totalorder %s2190_s0, %s1526_s27  ;;  %p1532_p6 = scmp.lt.u32.totalorder %s1526_s27, %s2190_s0 }
 0x2d6   : > { %p1528_p12 = pnand %p1527_p0, %p1277_p2 }
 0x2d8   : > { %p1529_p4 = pneg %p1528_p12 }
 0x2da   : > { %p1534_p1 = pnand %p1532_p6, %p1529_p4 }
 0x2dc   : > { %1537 = shalt.err (!%p1534_p1)
}
 0x2dd   : > { %s1652_s21 = smov 128   ;;  %s1653_s20 = smov 8  }
 0x2de   : > { %1257 = dma.vmem_to_hbm [thread:$0]  (%p1277_p2), %s967_s10, 1024, %s2190_s0, [#allocation7], %s1652_s21, %s1652_s21, %s1653_s20  }
 0x2df   : > { %1595 = dma.done.wait (%p1277_p2), [#allocation7], 1024  }
 0x2e0   : > { %1597 = vsyncadd (%p1277_p2), [#allocation7], 4294966272 }
 0x2e1 PF: > { %s23_s15 = sadd.s32 1, %s1640_s15   ;;  %s2191_s17 = sld [smem:[#allocation22_spill]] }
 0x2e2   : > { %p20_p8 = scmp.ge.s32.totalorder %s23_s15, 6   ;;  %s2192_s7 = sld [smem:[#allocation17_spill]] }
 0x2e3   : > { %s2193_s10 = sld [smem:[#allocation21_spill]]  ;;  %s2194_s11 = sld [smem:[#allocation18_spill]] }
 0x2e4   : > { %s2195_s13 = sld [smem:[#allocation19_spill]]  ;;  %s2196_s2 = sld [smem:[#allocation20_spill]] }
 0x2e5   : > { %s2197_s27 = smov %s1604_s28  ;;  %s2198_s28 = smov %s1608_s29 }
 0x2e6   : > { %s2200_s30 = smov %s1616_s9  ;;  %s2202_s12 = smov %s1636_s14 }
 0x2e7   : > { %s2199_s29 = smov %s2191_s17  ;;  %22 = sbr.rel (!%p20_p8) target bundleno = 15 (0xf), region = 141 }
 0x2e8   : > { %s2201_s9 = smov %s2192_s7 }
 0x2ea   : > { %s2203_s14 = smov %s2196_s2 }
 0x2ee   :  { %982 = vsyncpa [#allocation6], 1 }
 0x2ef   :  { %984 = vsyncpa [#allocation6 + $0x1], 1 }
 0x2f0   :  { %985 = vsyncpa [#allocation9], 1 }
 0x2f1   :  { %986 = vsyncpa [#allocation7], 1 }
 0x2f2   :  { %988 = vsyncpa [#allocation7 + $0x1], 1 }

</bundles_post_ra>
